<compile_context>
chip_gen: v7x
topology: tpu7x:2x2x1
jax: 0.10.0
libtpu: 0.0.40
codegen_flags: <defaults>
</compile_context>

<pallas_src>
import math

import jax
import jax.numpy as jnp
from jax.experimental import pallas as pl
from jax.experimental.pallas import tpu as pltpu


_VMEM_LIMIT_BYTES = 32 * 1024 * 1024   # safe scoped limit on v5e/v6e (128 MiB) and v7x (64 MiB)


def _auto_target_block_bytes() -> int:
    """~2 MiB blocks by default; ~4 MiB on chips with large VMEM (v5e/v6e)."""
    try:
        if pltpu.get_tpu_info().vmem_capacity_bytes >= 96 * 1024 * 1024:
            return 4 * 1024 * 1024
    except Exception:
        pass
    return 2 * 1024 * 1024


def make_positional_encoding_table(d_model: int, max_len: int = 5000,
                                   dtype=jnp.float32) -> jnp.ndarray:
    """Deterministic parameter setup (matches the PyTorch __init__).

    Returns pe of shape (max_len, d_model); the PyTorch buffer's middle singleton dim is
    dropped since forward() only reads pe[:, 0, :].
    """
    position = jnp.arange(max_len, dtype=jnp.float32)[:, None]              # (max_len, 1)
    div_term = jnp.exp(-(jnp.arange(0, d_model, 2, dtype=jnp.float32)
                         * math.log(10000.0) / d_model))                    # (ceil(d/2),)
    angles = position * div_term                                            # (max_len, ceil(d/2))
    pe = jnp.zeros((max_len, d_model), dtype=jnp.float32)
    pe = pe.at[:, 0::2].set(jnp.sin(angles))
    pe = pe.at[:, 1::2].set(jnp.cos(angles)[:, : d_model // 2])
    return pe.astype(dtype)


# ---------------------------------------------------------------------------
# Kernels (VPU broadcast-adds; memory-bound, no MXU involvement)
# ---------------------------------------------------------------------------

def _add_kernel_3d(x_ref, pe_ref, o_ref):
    # x_ref: (Bt, TS, D) block; pe_ref: (TS, D) (broadcast over the batch tile)
    o_ref[...] = (x_ref[...] + pe_ref[...]).astype(o_ref.dtype)


def _add_kernel_2d(x_ref, pe_ref, o_ref):
    # x_ref: (Bt, TF) lane-dense flattened block; pe_ref: (1, TF)
    o_ref[...] = (x_ref[...] + pe_ref[...]).astype(o_ref.dtype)


# ---------------------------------------------------------------------------
# Tile-size selection (trace-time Python, static shapes; cdiv grids handle raggedness)
# ---------------------------------------------------------------------------

def _pick_tiles_3d(B: int, S: int, D: int, itemsize: int, target: int):
    """Block (Bt, TS, D) of roughly `target` bytes.  TS is a multiple of 8 (or = S)."""
    row_bytes = D * itemsize
    ts = max(8, (target // row_bytes) // 8 * 8)
    if ts >= S:
        ts = S
        bt = max(1, min(B, target // max(S * row_bytes, 1)))   # grow batch tile instead
    else:
        bt = 1
    return bt, ts


def _pick_tiles_2d(B: int, F: int, itemsize: int, target: int):
    """Block (Bt, TF) of roughly `target` bytes.  TF is a multiple of 128 (or = F)."""
    tf = max(128, (target // max(B * itemsize, 1)) // 128 * 128)
    if tf >= F:
        tf = F
    bt = B
    if B * max(tf, 1) * itemsize > 2 * target and B > 8:       # huge-B safeguard (v7x VMEM)
        bt = max(8, min(B, (target // max(tf * itemsize, 1)) // 8 * 8))
    return bt, tf


# ---------------------------------------------------------------------------
# Forward
# ---------------------------------------------------------------------------

def positional_encoding_forward(x: jnp.ndarray,
                                pe_table: jnp.ndarray,
                                step_offset: int = 0,
                                *,
                                in_place: bool = False,
                                _target_block_bytes: int | None = None) -> jnp.ndarray:
    """x: (B, S, D).  Returns x + pe_table[step_offset:step_offset+S, :][None].

    step_offset must be a static Python int (it is in the PyTorch module too).
    """
    B, S, D = x.shape
    max_len, d_model = pe_table.shape
    if d_model != D:
        raise ValueError(f"pe_table d_model {d_model} != x d_model {D}")
    step_offset = int(step_offset)
    if step_offset < 0 or step_offset + S > max_len:
        raise ValueError(
            f"step_offset={step_offset} with seq_len={S} is out of range for max_len={max_len}")

    # Match pe to the activation dtype (halves pe HBM traffic for bf16 models; sin/cos
    # values live in [-1, 1], so bf16 precision is fine).
    if pe_table.dtype != x.dtype:
        pe_table = pe_table.astype(x.dtype)

    itemsize = jnp.dtype(x.dtype).itemsize
    target = _target_block_bytes if _target_block_bytes is not None else _auto_target_block_bytes()
    io_alias = {0: 0} if in_place else {}

    if D % 128 == 0:
        # ---------- Path A: d_model already lane-dense; keep 3-D layout ----------
        bt, ts = _pick_tiles_3d(B, S, D, itemsize, target)
        num_s = pl.cdiv(S, ts)
        num_b = pl.cdiv(B, bt)

        # Direct indexing of the full pe table (no extra HBM pass) requires a tile that
        # is 8-aligned, an aligned offset, and no reads past max_len on the ragged block.
        if ts % 8 == 0 and step_offset % ts == 0 and step_offset + num_s * ts <= max_len:
            pe_in = pe_table
            off_blk = step_offset // ts
        else:
            # TODO(synk): express unaligned offsets via scalar-prefetch / element indexing
            # instead of this small extra slice pass over the pe window.
            pe_in = jax.lax.slice(pe_table, (step_offset, 0), (step_offset + S, D))
            off_blk = 0

        return pl.pallas_call(
            _add_kernel_3d,
            out_shape=jax.ShapeDtypeStruct((B, S, D), x.dtype),
            grid=(num_s, num_b),                   # pe index depends only on the outer axis
            in_specs=[
                pl.BlockSpec((bt, ts, D), lambda s, b: (b, s, 0)),
                pl.BlockSpec((ts, D), lambda s, b: (off_blk + s, 0)),
            ],
            out_specs=pl.BlockSpec((bt, ts, D), lambda s, b: (b, s, 0)),
            compiler_params=pltpu.CompilerParams(
                dimension_semantics=("parallel", "parallel"),
                vmem_limit_bytes=_VMEM_LIMIT_BYTES),
            input_output_aliases=io_alias,
        )(x, pe_in)

    # ---------- Path B: D not a multiple of 128: flatten for lane-dense stores ----------
    F = S * D
    bt, tf = _pick_tiles_2d(B, F, itemsize, target)
    num_f = pl.cdiv(F, tf)
    num_b = pl.cdiv(B, bt)
    x2 = x.reshape(B, F)                           # metadata-only reshape (row-major)

    off_elem = step_offset * D
    if tf % 128 == 0 and off_elem % tf == 0 and off_elem + num_f * tf <= max_len * D:
        # View the whole table as one flat row and index it directly -> no extra HBM pass.
        pe2 = pe_table.reshape(1, max_len * D)
        off_blk = off_elem // tf
    else:
        pe2 = jax.lax.slice(pe_table, (step_offset, 0), (step_offset + S, D)).reshape(1, F)
        off_blk = 0

    out2 = pl.pallas_call(
        _add_kernel_2d,
        out_shape=jax.ShapeDtypeStruct((B, F), x.dtype),
        grid=(num_f, num_b),
        in_specs=[
            pl.BlockSpec((bt, tf), lambda f, b: (b, f)),
            pl.BlockSpec((1, tf), lambda f, b: (0, off_blk + f)),
        ],
        out_specs=pl.BlockSpec((bt, tf), lambda f, b: (b, f)),
        compiler_params=pltpu.CompilerParams(
            dimension_semantics=("parallel", "parallel"),
            vmem_limit_bytes=_VMEM_LIMIT_BYTES),
        input_output_aliases=io_alias,
    )(x2, pe2)
    return out2.reshape(B, S, D)


# ---------------------------------------------------------------------------
# Demo / correctness checks
# ---------------------------------------------------------------------------

if __name__ == "__main__":
    key = jax.random.PRNGKey(0)
    MAX_LEN = 64

    def _check(B, S, D, step_offset, k, dtype=jnp.float32, target=None,
               in_place=False, atol=1e-6, rtol=1e-6):
        x = jax.random.normal(k, (B, S, D), dtype=dtype)
        pe_table = make_positional_encoding_table(D, max_len=MAX_LEN, dtype=dtype)
        # Reference computed BEFORE the kernel call (safe w.r.t. in-place aliasing).
        ref = x + pe_table[step_offset:step_offset + S, :][None, :, :]
        out = jax.block_until_ready(
            positional_encoding_forward(x, pe_table, step_offset=step_offset,
                                        in_place=in_place,
                                        _target_block_bytes=target))
        assert out.shape == (B, S, D)
        assert jnp.allclose(out.astype(jnp.float32), ref.astype(jnp.float32),
                            atol=atol, rtol=rtol), \
            f"mismatch vs reference (B={B}, S={S}, D={D}, off={step_offset}, dtype={dtype})"

    keys = jax.random.split(key, 8)
    _check(2, 8, 32, 0, keys[0])                      # Path B, direct flat pe indexing
    _check(2, 8, 32, 5, keys[1])                      # Path B, unaligned offset -> slice fallback
    _check(2, 16, 128, 0, keys[2])                    # Path A, batch-tiled block, direct indexing
    _check(2, 16, 128, 16, keys[3])                   # Path A, aligned nonzero step_offset
    _check(2, 40, 128, 16, keys[4], target=8192)      # Path A, ragged cdiv last seq block
    _check(2, 5, 32, 0, keys[5], target=1024)         # Path B, ragged flat last block
    _check(2, 16, 128, 0, keys[6], in_place=True)     # aliased (in-place) output buffer
    _check(2, 16, 128, 0, keys[7], dtype=jnp.bfloat16, atol=0.125, rtol=0.05)  # bf16 round-trip

    print("KERNEL_OK")
</pallas_src>

<mosaic_0001>
module attributes {stable_mosaic.version = 11 : i64} {
  func.func @_add_kernel_2d(%arg0: i32, %arg1: i32, %arg2: memref<2x256xf32, #tpu.memory_space<vmem>>, %arg3: memref<1x256xf32, #tpu.memory_space<vmem>>, %arg4: memref<2x256xf32, #tpu.memory_space<vmem>>) attributes {dimension_semantics = [#tpu.dimension_semantics<parallel>, #tpu.dimension_semantics<parallel>], iteration_bounds = array<i64: 1, 1>, scalar_prefetch = 0 : i64, scratch_operands = 0 : i64, tpu.core_type = #tpu.core_type<tc>, window_params = [{transform_indices = @transform_0, window_bounds = array<i64: 2, 256>}, {transform_indices = @transform_1, window_bounds = array<i64: 1, 256>}, {transform_indices = @transform_2, window_bounds = array<i64: 2, 256>}]} {
    %c0 = arith.constant 0 : index
    %c0_0 = arith.constant 0 : index
    %0 = vector.load %arg2[%c0, %c0_0] : memref<2x256xf32, #tpu.memory_space<vmem>>, vector<2x256xf32>
    %c0_1 = arith.constant 0 : index
    %c0_2 = arith.constant 0 : index
    %1 = vector.load %arg3[%c0_1, %c0_2] : memref<1x256xf32, #tpu.memory_space<vmem>>, vector<1x256xf32>
    %2 = vector.broadcast %1 : vector<1x256xf32> to vector<2x256xf32>
    %3 = arith.addf %0, %2 : vector<2x256xf32>
    %c0_3 = arith.constant 0 : index
    %c0_4 = arith.constant 0 : index
    %4 = vector.load %arg4[%c0_3, %c0_4] : memref<2x256xf32, #tpu.memory_space<vmem>>, vector<2x256xf32>
    tpu.vector_store %arg4[%c0_3, %c0_4], %3 {strides = array<i32>} : memref<2x256xf32, #tpu.memory_space<vmem>>, vector<2x256xf32>,
    return
  }
  func.func @transform_0(%arg0: i32, %arg1: i32) -> (i32, i32) {
    %c0_i32 = arith.constant 0 : i32
    return %arg1, %arg0 : i32, i32
  }
  func.func @transform_1(%arg0: i32, %arg1: i32) -> (i32, i32) {
    %c0_i32 = arith.constant 0 : i32
    %0 = arith.addi %c0_i32, %arg0 : i32
    %c0_i32_0 = arith.constant 0 : i32
    %c0_i32_1 = arith.constant 0 : i32
    return %c0_i32_0, %0 : i32, i32
  }
  func.func @transform_2(%arg0: i32, %arg1: i32) -> (i32, i32) {
    %c0_i32 = arith.constant 0 : i32
    return %arg1, %arg0 : i32, i32
  }
}

</mosaic_0001>

<bundles_post_ra>
// kernel: tpu_custom_call.1
= control target key start
LH: loop header
LB: loop body
LE: loop exit
PB: predicated region body
PF: predicated region fallthrough
CT: control target
= control target key end

     0   :  { %7 = vsyncpa [#allocation3], 0  ;;  %s215_s0 = inlined_call_operand.hbm [shape: f32[2,256], index: 0, kind: input, shape index: {}]   ;;  %s216_s1 = inlined_call_operand.hbm [shape: f32[1,2048], index: 1, kind: input, shape index: {}]   ;;  %s217_s2 = inlined_call_operand.hbm [shape: f32[2,256], index: 2, kind: output, shape index: {}]  }
   0x1   :  { %8 = vsyncpa [#allocation6], 0 }
   0x2   :  { %9 = vsyncpa [#allocation4], 0  ;;  %s150_s9 = smov [#allocation2]   ;;  %s151_s11 = smov [#allocation5]  }
   0x3   :  { %s16_s10 = sshll.u32 %s150_s9, 4  ;;  %s26_s12 = sshll.u32 %s151_s11, 4  ;;  %s17_s10 = int_to_ptr.vmem [resolvable:$true] %s16_s10  ;;  %s169_s12 = int_to_ptr.vmem [resolvable:$true] %s26_s12 }
   0x4   :  { %s78_s15 = scalar_lea.hbm %s215_s0, 64 }
   0x5   :  { %p79_p0 = scmp.ne.s32.totalorder %s215_s0, %s78_s15  ;;  %p82_p1 = scmp.lt.u32.totalorder %s78_s15, %s215_s0 }
   0x7   :  { %p84_p2 = pnand %p82_p1, %p79_p0 }
   0x9   :  { %87 = shalt.err (!%p84_p2)
}
   0xa   :  { %s88_s20 = scalar_lea.vmem %s17_s10, 64  ;;  %p93_p4 = scmp.lt.s32.totalorder %s17_s10, %s17_s10 }
   0xb   :  { %p89_p3 = scmp.ne.s32.totalorder %s17_s10, %s88_s20  ;;  %p94_p5 = scmp.lt.s32.totalorder %s88_s20, %s88_s20 }
   0xd   :  { %p95_p6 = por %p94_p5, %p93_p4 }
   0xf   :  { %p96_p7 = pnand %p95_p6, %p89_p3 }
  0x11   :  { %99 = shalt.err (!%p96_p7)
}
  0x12   :  { %19 = dma.hbm_to_vmem [thread:$0]  %s215_s0, 64, %s17_s10, [#allocation3]  }
  0x13   :  { %s100_s25 = scalar_lea.hbm %s216_s1, 32  ;;  %s102_s30 = scalar_lea.hbm %s216_s1, 256 }
  0x14   :  { %p101_p8 = scmp.ne.s32.totalorder %s216_s1, %s100_s25  ;;  %p103_p9 = scmp.lt.u32.totalorder %s102_s30, %s100_s25 }
  0x15   :  { %p104_p10 = scmp.lt.u32.totalorder %s100_s25, %s216_s1 }
  0x17   :  { %p105_p11 = por %p104_p10, %p103_p9 }
  0x19   :  { %p106_p12 = pnand %p105_p11, %p101_p8 }
  0x1b   :  { %109 = shalt.err (!%p106_p12)
}
  0x1c   :  { %s110_s0 = scalar_lea.vmem %s169_s12, 32  ;;  %p115_p0 = scmp.lt.s32.totalorder %s169_s12, %s169_s12 }
  0x1d   :  { %p111_p13 = scmp.ne.s32.totalorder %s169_s12, %s110_s0  ;;  %p116_p1 = scmp.lt.s32.totalorder %s110_s0, %s110_s0 }
  0x1f   :  { %p117_p2 = por %p116_p1, %p115_p0 }
  0x21   :  { %p118_p3 = pnand %p117_p2, %p111_p13 }
  0x23   :  { %121 = shalt.err (!%p118_p3)
}
  0x24   :  { %29 = dma.hbm_to_vmem [thread:$0]  %s216_s1, 32, %s169_s12, [#allocation6]  }
  0x25   :  { %144 = dma.done.wait [#allocation3], 64  }
  0x26   :  { %145 = vsyncadd [#allocation3], 4294967232 }
  0x27   :  { %146 = dma.done.wait [#allocation6], 32  }
  0x28   :  { %147 = vsyncadd [#allocation6], 4294967264  ;;  %v39_v0 = vlaneseq  ;;  %v152_v1 = vmov 1983009808   ;;  %v37_v7 = vld [vmem:[#allocation5] sm:$0x3] }
  0x29   :  { %v49_v2 = vunpack.c.l.s4 %v152_v1  ;;  %v36_v12 = vld [vmem:[#allocation2] sm:$0xf]  ;;  %s153_s7 = smov [#allocation7]  }
  0x2a   :  { %v40_v3 = vshrl.u32 %v39_v0, 7  ;;  %s64_s8 = sshll.u32 %s153_s7, 4  ;;  %s65_s8 = int_to_ptr.vmem [resolvable:$true] %s64_s8 }
  0x2b   :  { %v50_v6 = vunpack.c.0.s8 %v49_v2  ;;  %s122_s1 = scalar_lea.vmem %s65_s8, 64  ;;  %p127_p5 = scmp.lt.s32.totalorder %s65_s8, %s65_s8 }
  0x2c   :  { %v41_v4 = vsub.s32 0, %v40_v3  ;;  %v45_v5 = vsub.s32 1, %v40_v3  ;;  %p123_p4 = scmp.ne.s32.totalorder %s65_s8, %s122_s1  ;;  %p128_p6 = scmp.lt.s32.totalorder %s122_s1, %s122_s1 }
  0x2d   :  { %v53_v10 = vsub.s32 %v50_v6, %v40_v3 }
  0x2e   :  { %v42_v8 = vrot.slane %v37_v7, %v41_v4  ;;  %v46_v9 = vrot.slane %v37_v7, %v45_v5  ;;  %p129_p7 = por %p128_p6, %p127_p5 }
  0x30   :  { %v47_v11 = vcombine.low %v42_v8, %v46_v9  ;;  %p130_p8 = pnand %p129_p7, %p123_p4 }
  0x32   :  { %v54_v13 = vrot.slane %v47_v11, %v53_v10 }
  0x34   :  { %v56_v14 = vadd.f32 %v54_v13, %v36_v12 }
  0x36   :  { %57 = vst [vmem:[#allocation7] sm:$0xf] %v56_v14 }
  0x37   :  { %133 = shalt.err (!%p130_p8)
}
  0x38   :  { %s134_s11 = scalar_lea.hbm %s217_s2, 64 }
  0x39   :  { %p135_p9 = scmp.ne.s32.totalorder %s217_s2, %s134_s11  ;;  %p138_p10 = scmp.lt.u32.totalorder %s134_s11, %s217_s2 }
  0x3b   :  { %p140_p11 = pnand %p138_p10, %p135_p9 }
  0x3d   :  { %143 = shalt.err (!%p140_p11)
}
  0x3e   :  { %67 = dma.vmem_to_hbm [thread:$0]  %s65_s8, 64, %s217_s2, [#allocation4]  }
  0x3f   :  { %148 = dma.done.wait [#allocation4], 64  }
  0x40   :  { %149 = vsyncadd [#allocation4], 4294967232 }
  0x41   :  { %71 = vsyncpa [#allocation3], 1 }
  0x42   :  { %72 = vsyncpa [#allocation6], 1 }
  0x43   :  { %73 = vsyncpa [#allocation4], 1 }

</bundles_post_ra>
